<compile_context>
chip_gen: v6e
topology: v6e:2x2x1
jax: 0.10.0
libtpu: 0.0.40
codegen_flags: <defaults>
</compile_context>

<pallas_src>
import functools
import math

import jax
import jax.numpy as jnp
from jax import lax
from jax.experimental import pallas as pl
from jax.experimental.pallas import tpu as pltpu


def _cdiv(a: int, b: int) -> int:
    return (a + b - 1) // b


def _round_up(a: int, b: int) -> int:
    return _cdiv(a, b) * b


_INV_SQRT_2 = 1.0 / math.sqrt(2.0)
_SQRT_2_OVER_PI = math.sqrt(2.0 / math.pi)


def _gelu(x, *, approximate):
    if approximate:
        # tanh approximation -> transcendental lands on the EUP slot and
        # co-issues with MXU pushes (useful on v5e when VALU-bound).
        return 0.5 * x * (1.0 + jnp.tanh(
            _SQRT_2_OVER_PI * (x + 0.044715 * x * x * x)))
    # nn.GELU() default = exact erf-based GELU.
    return 0.5 * x * (1.0 + lax.erf(x * jnp.float32(_INV_SQRT_2)))


# ----------------------------------------------------------------------------
# Kernel
# ----------------------------------------------------------------------------
def mix_mlp_kernel(x_ref, w1_ref, b1_ref, w2_ref, b2_ref, o_ref,
                   *, h_chunk, approximate_gelu):
    x = x_ref[...]                                  # (tile_m, D)
    if x.dtype != w1_ref.dtype:
        x = x.astype(w1_ref.dtype)                  # bf16 fast path (opt-in)

    h_pad = w1_ref.shape[1]                         # static, multiple of 128
    acc = None
    # Fully unrolled static chunk loop over the hidden dim: static ref slices
    # are zero-cost views and the unrolled body lets LLO overlap MXU / VPU /
    # EUP work across chunks.  Ragged last chunk is handled statically.
    for off in range(0, h_pad, h_chunk):
        cur = min(h_chunk, h_pad - off)
        h = jnp.dot(x, w1_ref[:, off:off + cur],
                    preferred_element_type=jnp.float32)
        h = h + b1_ref[:, off:off + cur]            # f32 bias
        g = _gelu(h, approximate=approximate_gelu)  # f32 GELU
        if w2_ref.dtype != jnp.float32:
            g = g.astype(w2_ref.dtype)              # only downcast for bf16 weights
        part = jnp.dot(g, w2_ref[off:off + cur, :],
                       preferred_element_type=jnp.float32)
        acc = part if acc is None else acc + part

    o_ref[...] = (acc + b2_ref[...]).astype(o_ref.dtype)


# ----------------------------------------------------------------------------
# One-time parameter preparation (call once, not per forward step)
# ----------------------------------------------------------------------------
def prepare_mix_mlp_params(w1, b1, w2, b2, *, compute_dtype=None):
    """w1: (D, H), b1: (H,), w2: (H, D), b2: (D,)  -- (in, out) layout
    (transposed vs. PyTorch Linear) so the kernel computes x @ W directly.

    Zero-pads H to a multiple of 128 (exact: padded hidden units get bias 0
    -> GELU(0)=0 and multiply zero rows of w2).  Optionally casts the weight
    matrices to `compute_dtype` (e.g. jnp.bfloat16) for the MXU fast path;
    biases stay f32 for accumulation accuracy.
    """
    D, H = w1.shape
    assert w2.shape == (H, D) and b1.shape == (H,) and b2.shape == (D,)
    h_pad = _round_up(H, 128)
    w1_p = jnp.pad(w1, ((0, 0), (0, h_pad - H)))
    w2_p = jnp.pad(w2, ((0, h_pad - H), (0, 0)))
    if compute_dtype is not None:
        w1_p = w1_p.astype(compute_dtype)
        w2_p = w2_p.astype(compute_dtype)
    b1_p = jnp.pad(b1.astype(jnp.float32), (0, h_pad - H)).reshape(1, h_pad)
    b2_p = b2.astype(jnp.float32).reshape(1, D)
    return w1_p, b1_p, w2_p, b2_p


def _vmem_capacity_bytes() -> int:
    try:
        return int(pltpu.get_tpu_info().vmem_capacity_bytes)
    except Exception:
        return 64 << 20          # conservative (v7x-sized) fallback


# ----------------------------------------------------------------------------
# Wrapper
# ----------------------------------------------------------------------------
def mix_mlp_block(x, w1_p, b1_p, w2_p, b2_p, *,
                  tile_m=None, approximate_gelu=False):
    """x: (..., D). Params must come from prepare_mix_mlp_params()."""
    orig_shape = x.shape
    D = orig_shape[-1]
    h_pad = w1_p.shape[1]
    assert w1_p.shape == (D, h_pad) and w2_p.shape == (h_pad, D)
    assert b1_p.shape == (1, h_pad) and b2_p.shape == (1, D)
    assert h_pad % 128 == 0

    x2 = x.reshape(-1, D)                 # layout no-op, no HBM pass
    M = x2.shape[0]

    vmem_cap = _vmem_capacity_bytes()
    small_vmem = vmem_cap < (96 << 20)    # v7x-like: 64 MiB/TC, 2 TensorCores

    # ---- row tiling (no M padding; Pallas clips the ragged last block;
    #      per-row independence keeps overhang garbage confined to rows whose
    #      writes are dropped) ------------------------------------------------
    if tile_m is None:
        tile_m = min(512, max(8, _round_up(M, 8)))
        if small_vmem:
            # 2-TC chip: prefer an even grid-step count so both cores get
            # equal rows; on single-TC chips keep the big 512-row tile.
            steps = _cdiv(M, tile_m)
            if steps > 1 and steps % 2 == 1:
                tile_m = max(8, _round_up(_cdiv(M, steps + 1), 8))
    tile_m = max(8, _round_up(tile_m, 8))
    grid_m = _cdiv(M, tile_m)

    # ---- hidden-dim chunking: bound the live f32 GELU intermediates --------
    inter_budget = (3 << 20) if small_vmem else (6 << 20)   # bytes per tensor
    max_chunk = max(128, ((inter_budget // 4) // tile_m) // 128 * 128)
    h_chunk = min(h_pad, max_chunk)

    # ---- explicit, generation-clamped VMEM budget ---------------------------
    lane, sub = 128, 8
    d_lane = _round_up(D, lane)
    bpe_x = jnp.dtype(x.dtype).itemsize
    bpe_w = jnp.dtype(w1_p.dtype).itemsize
    est = (
        4 * tile_m * d_lane * bpe_x                  # x + out tiles, double-buffered
        + _round_up(D, sub) * h_pad * bpe_w          # resident w1
        + h_pad * d_lane * bpe_w                     # resident w2
        + sub * (h_pad + d_lane) * 4                 # biases (sublane padded)
        + 2 * tile_m * h_chunk * 4                   # pre-/post-GELU f32 intermediates
        + 2 * tile_m * d_lane * 4                    # f32 accumulator + headroom
    )
    vmem_limit = min(int(vmem_cap * 0.85),
                     max(32 << 20, int(est * 1.5) + (2 << 20)))
    # NOTE: at MixMlpBlock scales (mlp_dim ~ 512) both weight matrices fit the
    # smallest VMEM comfortably; for much larger D/H, an H-tiling grid axis
    # ("arbitrary", last) with a VMEM accumulator would replace the
    # resident-weight scheme.

    kernel = functools.partial(mix_mlp_kernel,
                               h_chunk=h_chunk,
                               approximate_gelu=approximate_gelu)

    out = pl.pallas_call(
        kernel,
        out_shape=jax.ShapeDtypeStruct((M, D), x.dtype),
        grid=(grid_m,),
        in_specs=[
            pl.BlockSpec((tile_m, D), lambda i: (i, 0)),          # x rows (pipelined)
            pl.BlockSpec(memory_space=pltpu.MemorySpace.VMEM),    # w1 resident
            pl.BlockSpec(memory_space=pltpu.MemorySpace.VMEM),    # b1 resident
            pl.BlockSpec(memory_space=pltpu.MemorySpace.VMEM),    # w2 resident
            pl.BlockSpec(memory_space=pltpu.MemorySpace.VMEM),    # b2 resident
        ],
        out_specs=pl.BlockSpec((tile_m, D), lambda i: (i, 0)),
        compiler_params=pltpu.CompilerParams(
            dimension_semantics=("parallel",),
            vmem_limit_bytes=vmem_limit),
    )(x2, w1_p, b1_p, w2_p, b2_p)

    return out.reshape(orig_shape)


# ----------------------------------------------------------------------------
# Reference & self-test
# ----------------------------------------------------------------------------
def _reference(x, w1, b1, w2, b2):
    h = x @ w1 + b1
    g = 0.5 * h * (1.0 + lax.erf(h / jnp.sqrt(2.0)))
    return g @ w2 + b2


if __name__ == "__main__":
    # Small shapes consistent with the module: x is (batch, seq, input_dim).
    batch, seq, input_dim, mlp_dim = 2, 8, 32, 64

    key = jax.random.PRNGKey(0)
    kx, kw1, kb1, kw2, kb2 = jax.random.split(key, 5)

    x = jax.random.normal(kx, (batch, seq, input_dim), dtype=jnp.float32)

    # Deterministic param init (PyTorch Linear stores (out, in); we keep the
    # transposed (in, out) layout so the kernel computes x @ W directly).
    lim1 = 1.0 / math.sqrt(input_dim)
    w1 = jax.random.uniform(kw1, (input_dim, mlp_dim),
                            minval=-lim1, maxval=lim1, dtype=jnp.float32)
    b1 = jax.random.uniform(kb1, (mlp_dim,),
                            minval=-lim1, maxval=lim1, dtype=jnp.float32)
    lim2 = 1.0 / math.sqrt(mlp_dim)
    w2 = jax.random.uniform(kw2, (mlp_dim, input_dim),
                            minval=-lim2, maxval=lim2, dtype=jnp.float32)
    b2 = jax.random.uniform(kb2, (input_dim,),
                            minval=-lim2, maxval=lim2, dtype=jnp.float32)

    # One-time weight prep (pad H to 128; exact f32 path here).  Pass
    # compute_dtype=jnp.bfloat16 for the opt-in bf16 MXU fast path.
    params = prepare_mix_mlp_params(w1, b1, w2, b2, compute_dtype=None)
    params = jax.block_until_ready(params)

    out = mix_mlp_block(x, *params)
    out = jax.block_until_ready(out)

    ref = _reference(x.reshape(-1, input_dim), w1, b1, w2, b2).reshape(x.shape)
    assert out.shape == x.shape
    assert jnp.allclose(out, ref, atol=1e-5, rtol=1e-5), "mismatch vs reference"

    print("KERNEL_OK")
</pallas_src>

<mosaic_0001>
module attributes {stable_mosaic.version = 11 : i64} {
  func.func @mix_mlp_kernel(%arg0: i32, %arg1: memref<16x32xf32, #tpu.memory_space<vmem>>, %arg2: memref<32x128xf32, #tpu.memory_space<vmem>>, %arg3: memref<1x128xf32, #tpu.memory_space<vmem>>, %arg4: memref<128x32xf32, #tpu.memory_space<vmem>>, %arg5: memref<1x32xf32, #tpu.memory_space<vmem>>, %arg6: memref<16x32xf32, #tpu.memory_space<vmem>>) attributes {dimension_semantics = [#tpu.dimension_semantics<parallel>], iteration_bounds = array<i64: 1>, scalar_prefetch = 0 : i64, scratch_operands = 0 : i64, tpu.core_type = #tpu.core_type<tc>, window_params = [{transform_indices = @transform_0, window_bounds = array<i64: 16, 32>}, {pipeline_mode = #tpu.pipeline_mode<synchronous>, transform_indices = @transform_1, window_bounds = array<i64: 32, 128>}, {pipeline_mode = #tpu.pipeline_mode<synchronous>, transform_indices = @transform_2, window_bounds = array<i64: 1, 128>}, {pipeline_mode = #tpu.pipeline_mode<synchronous>, transform_indices = @transform_3, window_bounds = array<i64: 128, 32>}, {pipeline_mode = #tpu.pipeline_mode<synchronous>, transform_indices = @transform_4, window_bounds = array<i64: 1, 32>}, {transform_indices = @transform_5, window_bounds = array<i64: 16, 32>}]} {
    %c0 = arith.constant 0 : index
    %c0_0 = arith.constant 0 : index
    %0 = vector.load %arg1[%c0, %c0_0] : memref<16x32xf32, #tpu.memory_space<vmem>>, vector<16x32xf32>
    %c0_1 = arith.constant 0 : index
    %c0_2 = arith.constant 0 : index
    %1 = vector.load %arg2[%c0_1, %c0_2] : memref<32x128xf32, #tpu.memory_space<vmem>>, vector<32x128xf32>
    %cst = arith.constant dense<0.000000e+00> : vector<16x128xf32>
    %2 = tpu.matmul %0, %1, %cst {dimension_numbers = #tpu.dot_dimension_numbers<[1], [0], [0], [1], [0, 0, 1, 1], [], []>} : vector<16x32xf32>, vector<32x128xf32>, vector<16x128xf32> -> vector<16x128xf32>
    %c0_3 = arith.constant 0 : index
    %c0_4 = arith.constant 0 : index
    %3 = vector.load %arg3[%c0_3, %c0_4] : memref<1x128xf32, #tpu.memory_space<vmem>>, vector<1x128xf32>
    %4 = vector.broadcast %3 : vector<1x128xf32> to vector<16x128xf32>
    %5 = arith.addf %2, %4 : vector<16x128xf32>
    %cst_5 = arith.constant 5.000000e-01 : f32
    %6 = vector.broadcast %cst_5 : f32 to vector<16x128xf32>
    %7 = arith.mulf %6, %5 : vector<16x128xf32>
    %cst_6 = arith.constant 0.707106769 : f32
    %8 = vector.broadcast %cst_6 : f32 to vector<16x128xf32>
    %9 = arith.mulf %5, %8 : vector<16x128xf32>
    %10 = math.erf %9 : vector<16x128xf32>
    %cst_7 = arith.constant 1.000000e+00 : f32
    %11 = vector.broadcast %cst_7 : f32 to vector<16x128xf32>
    %12 = arith.addf %11, %10 : vector<16x128xf32>
    %13 = arith.mulf %7, %12 : vector<16x128xf32>
    %c0_8 = arith.constant 0 : index
    %c0_9 = arith.constant 0 : index
    %14 = vector.load %arg4[%c0_8, %c0_9] : memref<128x32xf32, #tpu.memory_space<vmem>>, vector<128x32xf32>
    %cst_10 = arith.constant dense<0.000000e+00> : vector<16x32xf32>
    %15 = tpu.matmul %13, %14, %cst_10 {dimension_numbers = #tpu.dot_dimension_numbers<[1], [0], [0], [1], [0, 0, 1, 1], [], []>} : vector<16x128xf32>, vector<128x32xf32>, vector<16x32xf32> -> vector<16x32xf32>
    %c0_11 = arith.constant 0 : index
    %c0_12 = arith.constant 0 : index
    %16 = vector.load %arg5[%c0_11, %c0_12] : memref<1x32xf32, #tpu.memory_space<vmem>>, vector<1x32xf32>
    %17 = vector.broadcast %16 : vector<1x32xf32> to vector<16x32xf32>
    %18 = arith.addf %15, %17 : vector<16x32xf32>
    %c0_13 = arith.constant 0 : index
    %c0_14 = arith.constant 0 : index
    %19 = vector.load %arg6[%c0_13, %c0_14] : memref<16x32xf32, #tpu.memory_space<vmem>>, vector<16x32xf32>
    tpu.vector_store %arg6[%c0_13, %c0_14], %18 {strides = array<i32>} : memref<16x32xf32, #tpu.memory_space<vmem>>, vector<16x32xf32>,
    return
  }
  func.func @transform_0(%arg0: i32) -> (i32, i32) {
    %c0_i32 = arith.constant 0 : i32
    %c0_i32_0 = arith.constant 0 : i32
    return %arg0, %c0_i32 : i32, i32
  }
  func.func @transform_1(%arg0: i32) -> (i32, i32) {
    %c0_i32 = arith.constant 0 : i32
    %c0_i32_0 = arith.constant 0 : i32
    %c0_i32_1 = arith.constant 0 : i32
    return %c0_i32, %c0_i32_0 : i32, i32
  }
  func.func @transform_2(%arg0: i32) -> (i32, i32) {
    %c0_i32 = arith.constant 0 : i32
    %c0_i32_0 = arith.constant 0 : i32
    %c0_i32_1 = arith.constant 0 : i32
    return %c0_i32, %c0_i32_0 : i32, i32
  }
  func.func @transform_3(%arg0: i32) -> (i32, i32) {
    %c0_i32 = arith.constant 0 : i32
    %c0_i32_0 = arith.constant 0 : i32
    %c0_i32_1 = arith.constant 0 : i32
    return %c0_i32, %c0_i32_0 : i32, i32
  }
  func.func @transform_4(%arg0: i32) -> (i32, i32) {
    %c0_i32 = arith.constant 0 : i32
    %c0_i32_0 = arith.constant 0 : i32
    %c0_i32_1 = arith.constant 0 : i32
    return %c0_i32, %c0_i32_0 : i32, i32
  }
  func.func @transform_5(%arg0: i32) -> (i32, i32) {
    %c0_i32 = arith.constant 0 : i32
    %c0_i32_0 = arith.constant 0 : i32
    return %arg0, %c0_i32 : i32, i32
  }
}

</mosaic_0001>

<bundles_post_ra>
// kernel: tpu_custom_call.1
= control target key start
LH: loop header
LB: loop body
LE: loop exit
PB: predicated region body
PF: predicated region fallthrough
CT: control target
= control target key end

     0   :  { %vm34_vm0 = vcmask 261120   ;;  %s457_s0 = inlined_call_operand.vmem [shape: f32[16,32], index: 0, kind: input, shape index: {}]   ;;  %s458_s1 = inlined_call_operand.vmem [shape: f32[32,128], index: 1, kind: input, shape index: {}]   ;;  %s459_s2 = inlined_call_operand.vmem [shape: f32[1,128], index: 2, kind: input, shape index: {}]   ;;  %s460_s3 = inlined_call_operand.vmem [shape: f32[128,32], index: 3, kind: input, shape index: {}]   ;;  %s461_s4 = inlined_call_operand.vmem [shape: f32[1,32], index: 4, kind: input, shape index: {}]   ;;  %s462_s5 = inlined_call_operand.hbm [shape: f32[16,32], index: 5, kind: output, shape index: {}]  }
   0x1   :  { %v26_v0 = vld [vmem:[%s458_s1 + $0x18] sm:$0xff]  ;;  %v25_v1 = vld [vmem:[%s458_s1 + $0x10] sm:$0xff]  ;;  %v21_v2 = vld [vmem:[%s457_s0] sm:$0xff] }
   0x2   :  { %270 = vmatprep.subr.mxu0 %v26_v0  ;;  %v24_v3 = vld [vmem:[%s458_s1 + $0x8] sm:$0xff]  ;;  %278 = vmatprep.mubr.msk.f32.mxu0 %vm34_vm0, %v21_v2  ;;  %v141_v4 = vld [vmem:[%s460_s3 + $0x78] sm:$0xff]  ;;  %v140_v5 = vld [vmem:[%s460_s3 + $0x70] sm:$0xff] }
   0x3   :  { %271 = vmatpush3.msra.mxu0 %v26_v0  ;;  %281 = vmatprep.subr.mxu1 %v141_v4 }
   0x4   :  { %272 = vmatprep.subr.mxu0 %v25_v1 }
   0x5   :  { %10 = vsyncpa [#allocation3], 0  ;;  %273 = vmatpush3.msra.mxu0 %v25_v1  ;;  %v23_v6 = vld [vmem:[%s458_s1] sm:$0xff]  ;;  %282 = vmatpush3.msra.mxu1 %v141_v4  ;;  %v139_v7 = vld [vmem:[%s460_s3 + $0x68] sm:$0xff]  ;;  %s345_s11 = smov [#allocation2]  }
   0x6   :  { %274 = vmatprep.subr.mxu0 %v24_v3  ;;  %283 = vmatprep.subr.mxu1 %v140_v5  ;;  %v22_v8 = vld [vmem:[%s457_s0 + $0x8] sm:$0xff]  ;;  %v138_v9 = vld [vmem:[%s460_s3 + $0x60] sm:$0xff]  ;;  %v137_v10 = vld [vmem:[%s460_s3 + $0x58] sm:$0xff]  ;;  %s231_s12 = sshll.u32 %s345_s11, 4  ;;  %s232_s12 = int_to_ptr.vmem [resolvable:$true] %s231_s12 }
   0x7   :  { %275 = vmatpush3.msra.mxu0 %v24_v3  ;;  %284 = vmatpush3.msra.mxu1 %v140_v5  ;;  %v136_v11 = vld [vmem:[%s460_s3 + $0x50] sm:$0xff]  ;;  %v135_v12 = vld [vmem:[%s460_s3 + $0x48] sm:$0xff]  ;;  %v134_v13 = vld [vmem:[%s460_s3 + $0x40] sm:$0xff]  ;;  %s323_s13 = scalar_lea.vmem %s232_s12, 256  ;;  %p328_p1 = scmp.lt.s32.totalorder %s232_s12, %s232_s12 }
   0x8   :  { %276 = vmatprep.subr.mxu0 %v23_v6  ;;  %285 = vmatprep.subr.mxu1 %v139_v7  ;;  %v133_v14 = vld [vmem:[%s460_s3 + $0x38] sm:$0xff]  ;;  %v132_v15 = vld [vmem:[%s460_s3 + $0x30] sm:$0xff]  ;;  %v131_v16 = vld [vmem:[%s460_s3 + $0x28] sm:$0xff]  ;;  %p324_p0 = scmp.ne.s32.totalorder %s232_s12, %s323_s13  ;;  %p329_p2 = scmp.lt.s32.totalorder %s323_s13, %s323_s13 }
   0x9   :  { %277 = vmatpush3.msra.mxu0 %v23_v6  ;;  %286 = vmatpush3.msra.mxu1 %v139_v7  ;;  %v130_v17 = vld [vmem:[%s460_s3 + $0x20] sm:$0xff]  ;;  %v129_v18 = vld [vmem:[%s460_s3 + $0x18] sm:$0xff]  ;;  %v128_v19 = vld [vmem:[%s460_s3 + $0x10] sm:$0xff] }
   0xa   :  { %279 = vmatmul.mubr.msk.f32.vlgmr.msra.gmra.mxu0 %vm34_vm0, %v22_v8  ;;  %287 = vmatprep.subr.mxu1 %v138_v9  ;;  %v127_v20 = vld [vmem:[%s460_s3 + $0x8] sm:$0xff]  ;;  %v126_v21 = vld [vmem:[%s460_s3] sm:$0xff]  ;;  %p330_p3 = por %p329_p2, %p328_p1 }
   0xb   :  { %288 = vmatpush3.msra.mxu1 %v138_v9  ;;  %v242_v22 = vld [vmem:[%s459_s2] ss:$0 sm:$0xff] }
   0xc   :  { %289 = vmatprep.subr.mxu1 %v137_v10  ;;  %v245_v37 = vld [vmem:[%s461_s4] ss:$0 sm:$0xff]  ;;  %p331_p4 = pnand %p330_p3, %p324_p0 }
   0xd   :  { %290 = vmatpush3.msra.mxu1 %v137_v10 }
   0xe   :  { %291 = vmatprep.subr.mxu1 %v136_v11 }
   0xf   :  { %292 = vmatpush3.msra.mxu1 %v136_v11 }
  0x10   :  { %293 = vmatprep.subr.mxu1 %v135_v12 }
  0x11   :  { %294 = vmatpush3.msra.mxu1 %v135_v12 }
  0x12   :  { %295 = vmatprep.subr.mxu1 %v134_v13 }
  0x13   :  { %296 = vmatpush3.msra.mxu1 %v134_v13 }
  0x14   :  { %297 = vmatprep.subr.mxu1 %v133_v14 }
  0x15   :  { %298 = vmatpush3.msra.mxu1 %v133_v14 }
  0x16   :  { %299 = vmatprep.subr.mxu1 %v132_v15 }
  0x17   :  { %300 = vmatpush3.msra.mxu1 %v132_v15 }
  0x18   :  { %301 = vmatprep.subr.mxu1 %v131_v16 }
  0x19   :  { %302 = vmatpush3.msra.mxu1 %v131_v16 }
  0x1a   :  { %303 = vmatprep.subr.mxu1 %v130_v17 }
  0x1b   :  { %304 = vmatpush3.msra.mxu1 %v130_v17 }
  0x1c   :  { %305 = vmatprep.subr.mxu1 %v129_v18 }
  0x1d   :  { %306 = vmatpush3.msra.mxu1 %v129_v18 }
  0x1e   :  { %307 = vmatprep.subr.mxu1 %v128_v19 }
  0x1f   :  { %308 = vmatpush3.msra.mxu1 %v128_v19 }
  0x20   :  { %309 = vmatprep.subr.mxu1 %v127_v20 }
  0x21   :  { %310 = vmatpush3.msra.mxu1 %v127_v20 }
  0x22   :  { %311 = vmatprep.subr.mxu1 %v126_v21 }
  0x23   :  { %312 = vmatpush3.msra.mxu1 %v126_v21 }
  0xca   :  { %v280_v23 = vpop.f32.mrf.mxu0 }
  0xcb   :  { %v113_v24 = vadd.f32 %v280_v23, %v242_v22 }
  0xcc   :  { %v107_v25 = vpop.f32.mrf.mxu0 }
  0xcd   :  { %v119_v26 = vmul.f32 0.70710677, %v113_v24  ;;  %v108_v27 = vadd.f32 %v242_v22, %v107_v25  ;;  %v117_v34 = vmul.f32 0.5, %v113_v24 }
  0xcf   :  { %319 = verf.f32 %v119_v26  ;;  %v118_v28 = vmul.f32 0.70710677, %v108_v27  ;;  %v116_v32 = vmul.f32 0.5, %v108_v27 }
  0xd1   :  { %321 = verf.f32 %v118_v28 }
  0xdc   :  { %v320_v29 = vpop.eup %319 }
  0xdd   :  { %v123_v31 = vadd.f32 1.0, %v320_v29 }
  0xde   :  { %v322_v30 = vpop.eup %321 }
  0xdf   :  { %v122_v33 = vadd.f32 1.0, %v322_v30  ;;  %v125_v36 = vmul.f32 %v123_v31, %v117_v34 }
  0xe1   :  { %v124_v35 = vmul.f32 %v122_v33, %v116_v32 }
  0xe3   :  { %313 = vmatprep.mubr.f32.mxu1 %v124_v35 }
  0xe4   :  { %314 = vmatmul.mubr.f32.vlgmr.msra.gmra.mxu1 %v125_v36 }
 0x1a4   :  { %v315_v38 = vpop.f32.mrf.mxu1 }
 0x1a5   :  { %v221_v39 = vadd.f32 %v315_v38, %v245_v37 }
 0x1a6   :  { %v215_v40 = vpop.f32.mrf.mxu1 }
 0x1a7   :  { %225 = vst.msk [vmem:[#allocation2 + $0x8] sm:$0xff] %vm34_vm0, %v221_v39  ;;  %v216_v41 = vadd.f32 %v245_v37, %v215_v40 }
 0x1a9   :  { %224 = vst.msk [vmem:[#allocation2] sm:$0xff] %vm34_vm0, %v216_v41 }
 0x1aa   :  { %334 = shalt.err (!%p331_p4)
}
 0x1ab   :  { %s346_s0 = smov 128   ;;  %s347_s4 = smov 8  }
 0x1ac   :  { %237 = dma.vmem_to_hbm [thread:$0]  %s232_s12, 256, %s462_s5, [#allocation3], %s346_s0, %s346_s0, %s347_s4  }
 0x1ad   :  { %343 = dma.done.wait [#allocation3], 256  }
 0x1ae   :  { %344 = vsyncadd [#allocation3], 4294967040 }
 0x1af   :  { %241 = vsyncpa [#allocation3], 1 }

</bundles_post_ra>
